<compile_context>
chip_gen: v6e
topology: v6e:2x2x1
jax: 0.10.0
libtpu: 0.0.40
codegen_flags: <defaults>
</compile_context>

<pallas_src>
import functools

import jax
import jax.numpy as jnp
from jax import lax
from jax.experimental import pallas as pl
from jax.experimental.pallas import tpu as pltpu


def _spatial_attention_kernel(x_ref, w_ref, b_ref, o_ref, *, use_bf16):
    c = x_ref.shape[2]

    x = x_ref[...]                                   # (bb, S, C)
    w = w_ref[...]                                   # (C, 3C)
    if use_bf16:
        x = x.astype(jnp.bfloat16)

    # ---- fused QKV projection: one MXU matmul (leading dims fold into M) ----
    qkv = lax.dot_general(x, w, (((2,), (0,)), ((), ())),
                          preferred_element_type=jnp.float32)
    qkv = qkv + b_ref[...]                           # (bb, S, 3C), f32
    q = qkv[..., :c]
    k = qkv[..., c:2 * c]
    v = qkv[..., 2 * c:]

    # ---- attention scores: contract channel dims directly (no k transpose) --
    if use_bf16:
        q = q.astype(jnp.bfloat16)
        k = k.astype(jnp.bfloat16)
    scores = lax.dot_general(q, k, (((2,), (2,)), ((0,), (0,))),
                             preferred_element_type=jnp.float32)   # (bb, S, S)

    # ---- numerically-stable softmax, all f32, exact divide ------------------
    scores = scores - jnp.max(scores, axis=-1, keepdims=True)
    p = jnp.exp(scores)
    p = p / jnp.sum(p, axis=-1, keepdims=True)

    # ---- weighted values -----------------------------------------------------
    if use_bf16:
        p = p.astype(jnp.bfloat16)
        v = v.astype(jnp.bfloat16)
    out = lax.dot_general(p, v, (((2,), (1,)), ((0,), (0,))),
                          preferred_element_type=jnp.float32)      # (bb, S, C)
    o_ref[...] = out.astype(o_ref.dtype)


def prepare_qkv_params(wq, bq, wk, bk, wv, bv, *, use_bf16_matmul=False):
    """Fuse the q/k/v Linear parameters ONCE at init time.

    w*: (C_in, C_out) (already transposed vs. torch nn.Linear.weight), b*: (C,).
    Returns (w_qkv (C, 3C), b_qkv (1, 3C) f32).
    """
    w_qkv = jnp.concatenate([wq, wk, wv], axis=1)
    b_qkv = jnp.concatenate([bq, bk, bv], axis=0).astype(jnp.float32)[None, :]
    if use_bf16_matmul:
        w_qkv = w_qkv.astype(jnp.bfloat16)
    return w_qkv, b_qkv


def _pick_block_b(B, S, C, *, itemsize, vmem_budget_bytes):
    # Target ~1024 matmul rows per grid step: fills 256-row MXU passes (v6e/v7x)
    # several times over and amortizes the ~0.35us per-grid-step overhead.
    target_rows = 1024
    bb = max(1, min(B, -(-target_rows // max(S, 1))))

    def vmem_bytes(bb):
        rows = bb * S
        io = 2 * (rows * C * itemsize) * 2               # x + out blocks, double-buffered
        wgt = (3 * C * C * itemsize + 3 * C * 4) * 2     # fused weight + bias, double-buffered
        inter = rows * (3 * C + 3 * C + 2 * S + C) * 4   # qkv, q/k/v, scores+p, acc (f32)
        return io + wgt + inter

    while bb > 1 and vmem_bytes(bb) > vmem_budget_bytes:
        bb -= 1
    # v7x has 2 TensorCores: keep >= 2 "parallel" grid steps whenever B >= 2.
    if B >= 2:
        bb = min(bb, -(-B // 2))
    return bb


def spatial_attention(x, w_qkv, b_qkv, *, block_b=None, use_bf16_matmul=False):
    """x: (B, S, C); w_qkv: (C, 3C); b_qkv: (1, 3C). Returns softmax(Q K^T) V, (B, S, C)."""
    B, S, C = x.shape
    assert w_qkv.shape == (C, 3 * C) and b_qkv.shape == (1, 3 * C)

    if block_b is None:
        # Budget sized against v7x (64 MiB physical VMEM / 32 MiB default scoped).
        block_b = _pick_block_b(B, S, C, itemsize=x.dtype.itemsize,
                                vmem_budget_bytes=20 * 1024 * 1024)
    block_b = max(1, min(block_b, B))
    grid = (pl.cdiv(B, block_b),)   # partial tail block is safe (batch rows independent)

    x_spec = pl.BlockSpec((block_b, S, C), lambda i: (i, 0, 0))
    w_spec = pl.BlockSpec((C, 3 * C), lambda i: (0, 0))
    b_spec = pl.BlockSpec((1, 3 * C), lambda i: (0, 0))
    out_spec = pl.BlockSpec((block_b, S, C), lambda i: (i, 0, 0))

    return pl.pallas_call(
        functools.partial(_spatial_attention_kernel, use_bf16=use_bf16_matmul),
        out_shape=jax.ShapeDtypeStruct((B, S, C), x.dtype),
        grid_spec=pltpu.PrefetchScalarGridSpec(
            num_scalar_prefetch=0,
            grid=grid,
            in_specs=[x_spec, w_spec, b_spec],
            out_specs=out_spec,
        ),
        compiler_params=pltpu.CompilerParams(
            dimension_semantics=("parallel",),
            vmem_limit_bytes=40 * 1024 * 1024,
        ),
    )(x, w_qkv, b_qkv)


def reference(x, wq, bq, wk, bk, wv, bv):
    q = x @ wq + bq
    k = x @ wk + bk
    v = x @ wv + bv
    s = jnp.einsum("bqc,bkc->bqk", q, k)
    p = jax.nn.softmax(s, axis=-1)
    return jnp.einsum("bqk,bkc->bqc", p, v)


if __name__ == "__main__":
    B, S, C = 2, 16, 32   # batch=2, spatial positions=16, in_channels=32
    key = jax.random.PRNGKey(0)
    kx, kwq, kbq, kwk, kbk, kwv, kbv = jax.random.split(key, 7)

    x = jax.random.normal(kx, (B, S, C), dtype=jnp.float32)

    # nn.Linear(in_channels, in_channels): weight (C_out, C_in), bias (C_out,).
    # Stored pre-transposed (C_in, C_out) so the kernel computes x @ W_t + b.
    scale = 1.0 / jnp.sqrt(C)
    wq = (jax.random.uniform(kwq, (C, C), jnp.float32, -1, 1) * scale).T
    wk = (jax.random.uniform(kwk, (C, C), jnp.float32, -1, 1) * scale).T
    wv = (jax.random.uniform(kwv, (C, C), jnp.float32, -1, 1) * scale).T
    bq = jax.random.uniform(kbq, (C,), jnp.float32, -1, 1) * scale
    bk = jax.random.uniform(kbk, (C,), jnp.float32, -1, 1) * scale
    bv = jax.random.uniform(kbv, (C,), jnp.float32, -1, 1) * scale

    # Fused parameters built once ("init time"), reused across calls.
    w_qkv, b_qkv = prepare_qkv_params(wq, bq, wk, bk, wv, bv)

    out = spatial_attention(x, w_qkv, b_qkv)
    out = jax.block_until_ready(out)

    ref = reference(x, wq, bq, wk, bk, wv, bv)
    assert out.shape == (B, S, C)
    assert jnp.max(jnp.abs(out - ref)) < 1e-3, "mismatch vs pure-JAX reference"

    print("KERNEL_OK")
</pallas_src>

<mosaic_0001>
module attributes {stable_mosaic.version = 11 : i64} {
  func.func @_spatial_attention_kernel(%arg0: i32, %arg1: memref<1x16x32xf32, #tpu.memory_space<vmem>>, %arg2: memref<32x96xf32, #tpu.memory_space<vmem>>, %arg3: memref<1x96xf32, #tpu.memory_space<vmem>>, %arg4: memref<1x16x32xf32, #tpu.memory_space<vmem>>) attributes {dimension_semantics = [#tpu.dimension_semantics<parallel>], iteration_bounds = array<i64: 2>, scalar_prefetch = 0 : i64, scratch_operands = 0 : i64, tpu.core_type = #tpu.core_type<tc>, window_params = [{transform_indices = @transform_0, window_bounds = array<i64: 1, 16, 32>}, {pipeline_mode = #tpu.pipeline_mode<synchronous>, transform_indices = @transform_1, window_bounds = array<i64: 32, 96>}, {pipeline_mode = #tpu.pipeline_mode<synchronous>, transform_indices = @transform_2, window_bounds = array<i64: 1, 96>}, {transform_indices = @transform_3, window_bounds = array<i64: 1, 16, 32>}]} {
    %c0 = arith.constant 0 : index
    %c0_0 = arith.constant 0 : index
    %c0_1 = arith.constant 0 : index
    %0 = vector.load %arg1[%c0, %c0_0, %c0_1] : memref<1x16x32xf32, #tpu.memory_space<vmem>>, vector<1x16x32xf32>
    %c0_2 = arith.constant 0 : index
    %c0_3 = arith.constant 0 : index
    %1 = vector.load %arg2[%c0_2, %c0_3] : memref<32x96xf32, #tpu.memory_space<vmem>>, vector<32x96xf32>
    %cst = arith.constant dense<0.000000e+00> : vector<1x16x96xf32>
    %2 = tpu.matmul %0, %1, %cst {dimension_numbers = #tpu.dot_dimension_numbers<[2], [0], [0, 1], [1], [0, 0, 0, 1, 1, 1], [], []>} : vector<1x16x32xf32>, vector<32x96xf32>, vector<1x16x96xf32> -> vector<1x16x96xf32>
    %c0_4 = arith.constant 0 : index
    %c0_5 = arith.constant 0 : index
    %3 = vector.load %arg3[%c0_4, %c0_5] : memref<1x96xf32, #tpu.memory_space<vmem>>, vector<1x96xf32>
    %4 = vector.shape_cast %3 : vector<1x96xf32> to vector<1x1x96xf32>
    %5 = vector.broadcast %4 : vector<1x1x96xf32> to vector<1x16x96xf32>
    %6 = arith.addf %2, %5 : vector<1x16x96xf32>
    %7 = vector.extract_strided_slice %6 {offsets = [0, 0, 0], sizes = [1, 16, 32], strides = [1, 1, 1]} : vector<1x16x96xf32> to vector<1x16x32xf32>
    %8 = vector.extract_strided_slice %6 {offsets = [0, 0, 32], sizes = [1, 16, 32], strides = [1, 1, 1]} : vector<1x16x96xf32> to vector<1x16x32xf32>
    %9 = vector.extract_strided_slice %6 {offsets = [0, 0, 64], sizes = [1, 16, 32], strides = [1, 1, 1]} : vector<1x16x96xf32> to vector<1x16x32xf32>
    %cst_6 = arith.constant dense<0.000000e+00> : vector<1x16x16xf32>
    %10 = tpu.matmul %7, %8, %cst_6 {dimension_numbers = #tpu.dot_dimension_numbers<[2], [2], [1], [1], [0, 0, 0, 1, 1, 1], [0], [0]>} : vector<1x16x32xf32>, vector<1x16x32xf32>, vector<1x16x16xf32> -> vector<1x16x16xf32>
    %cst_7 = arith.constant dense<0xFF800000> : vector<1x16xf32>
    %11 = vector.multi_reduction <maximumf>, %10, %cst_7 [2] : vector<1x16x16xf32> to vector<1x16xf32>
    %12 = vector.shape_cast %11 : vector<1x16xf32> to vector<1x16x1xf32>
    %13 = vector.broadcast %12 : vector<1x16x1xf32> to vector<1x16x16xf32>
    %14 = arith.subf %10, %13 : vector<1x16x16xf32>
    %15 = math.exp %14 : vector<1x16x16xf32>
    %cst_8 = arith.constant dense<0.000000e+00> : vector<1x16xf32>
    %16 = vector.multi_reduction <add>, %15, %cst_8 [2] : vector<1x16x16xf32> to vector<1x16xf32>
    %17 = vector.shape_cast %16 : vector<1x16xf32> to vector<1x16x1xf32>
    %18 = vector.broadcast %17 : vector<1x16x1xf32> to vector<1x16x16xf32>
    %19 = arith.divf %15, %18 : vector<1x16x16xf32>
    %cst_9 = arith.constant dense<0.000000e+00> : vector<1x16x32xf32>
    %20 = tpu.matmul %19, %9, %cst_9 {dimension_numbers = #tpu.dot_dimension_numbers<[2], [1], [1], [2], [0, 0, 0, 1, 1, 2], [0], [0]>} : vector<1x16x16xf32>, vector<1x16x32xf32>, vector<1x16x32xf32> -> vector<1x16x32xf32>
    %c0_10 = arith.constant 0 : index
    %c0_11 = arith.constant 0 : index
    %c0_12 = arith.constant 0 : index
    %21 = vector.load %arg4[%c0_10, %c0_11, %c0_12] : memref<1x16x32xf32, #tpu.memory_space<vmem>>, vector<1x16x32xf32>
    tpu.vector_store %arg4[%c0_10, %c0_11, %c0_12], %20 {strides = array<i32>} : memref<1x16x32xf32, #tpu.memory_space<vmem>>, vector<1x16x32xf32>,
    return
  }
  func.func @transform_0(%arg0: i32) -> (i32, i32, i32) {
    %c0_i32 = arith.constant 0 : i32
    %c0_i32_0 = arith.constant 0 : i32
    %c0_i32_1 = arith.constant 0 : i32
    return %arg0, %c0_i32, %c0_i32_0 : i32, i32, i32
  }
  func.func @transform_1(%arg0: i32) -> (i32, i32) {
    %c0_i32 = arith.constant 0 : i32
    %c0_i32_0 = arith.constant 0 : i32
    %c0_i32_1 = arith.constant 0 : i32
    return %c0_i32, %c0_i32_0 : i32, i32
  }
  func.func @transform_2(%arg0: i32) -> (i32, i32) {
    %c0_i32 = arith.constant 0 : i32
    %c0_i32_0 = arith.constant 0 : i32
    %c0_i32_1 = arith.constant 0 : i32
    return %c0_i32, %c0_i32_0 : i32, i32
  }
  func.func @transform_3(%arg0: i32) -> (i32, i32, i32) {
    %c0_i32 = arith.constant 0 : i32
    %c0_i32_0 = arith.constant 0 : i32
    %c0_i32_1 = arith.constant 0 : i32
    return %arg0, %c0_i32, %c0_i32_0 : i32, i32, i32
  }
}

</mosaic_0001>

<bundles_post_ra>
// kernel: tpu_custom_call.1
= control target key start
LH: loop header
LB: loop body
LE: loop exit
PB: predicated region body
PF: predicated region fallthrough
CT: control target
= control target key end

     0   :  { %8 = vsyncpa [#allocation3], 0  ;;  %s1093_s0 = inlined_call_operand.hbm [shape: f32[2,16,32], index: 0, kind: input, shape index: {}]   ;;  %s1094_s1 = inlined_call_operand.hbm [shape: f32[32,96], index: 1, kind: input, shape index: {}]   ;;  %s1095_s2 = inlined_call_operand.vmem [shape: f32[1,96], index: 2, kind: input, shape index: {}]   ;;  %s1096_s3 = inlined_call_operand.hbm [shape: f32[2,16,32], index: 3, kind: output, shape index: {}]  }
   0x1   :  { %10 = vsyncpa [#allocation3 + $0x1], 0 }
   0x2   :  { %11 = vsyncpa [#allocation6], 0 }
   0x3   :  { %12 = vsyncpa [#allocation4], 0 }
   0x4   :  { %14 = vsyncpa [#allocation4 + $0x1], 0  ;;  %s887_s12 = smov 0   ;;  %s889_s13 = smov 0  }
   0x5   :  { %s891_s14 = smov 0   ;;  %s893_s15 = smov 0  }
   0x6 LB: > { %s908_s16 = sadd.s32 4294967295, %s856_s15   ;;  %s597_s17 = sadd.s32 4294967294, %s856_s15   ;;  %s856_s15 = sphi %s893_s15, %s1118_s15   ;;  %s852_s14 = sphi %s891_s14, %s1117_s14   ;;  %s848_s13 = sphi %s889_s13, %s1116_s13   ;;  %s844_s12 = sphi %s887_s12, %s1115_s12  }
   0x7   : > { %p40_p0 = scmp.ne.s32.totalorder %s848_s13, %s844_s12  ;;  %p1097_p1 = scmp.eq.s32.totalorder %s908_s16, 0 }
   0x8   : > { %p112_p3 = scmp.eq.s32.totalorder %s597_s17, 1  ;;  %p598_p5 = scmp.ge.s32.totalorder %s856_s15, 1 }
   0x9   : > { %p917_p4 = por %p1097_p1, %p40_p0  ;;  %p119_p7 = scmp.lt.s32.totalorder %s856_s15, 3 }
   0xa   : > { %p922_p6 = por %p112_p3, %p40_p0  ;;  %s858_s21 = smov [#allocation5]  }
   0xb   : > { %s1101_s18 = scalar_select %p917_p4, 1, 0 }
   0xc   : > { %s1102_s19 = scalar_select %p922_p6, 1, 0 }
   0xd   : > { %p927_p8 = pnand %p598_p5, %p119_p7  ;;  %s131_s22 = sshll.u32 %s858_s21, 4  ;;  %s132_s22 = int_to_ptr.vmem [resolvable:$true] %s131_s22 }
   0xe   : > { %s941_s24 = sadd.s32 1, %s856_s15   ;;  %s27_s25 = sadd.s32 1, %s852_s14 }
   0xf   : > { %s1103_s20 = scalar_select %p927_p8, 1, 0 }
  0x10   : > { %p671_p9 = pneg %p927_p8  ;;  %s24_s26 = ssub.s32 %s856_s15, %s941_s24 }
  0x11   : > { %s745_s27 = scalar_lea.vmem %s132_s22, 512  ;;  %p753_p5 = scmp.lt.s32.totalorder %s132_s22, %s132_s22 }
  0x12   : > { %p936_p11 = pnand %p671_p9, %p1097_p1  ;;  %p746_p13 = scmp.ne.s32.totalorder %s132_s22, %s745_s27 }
  0x13   : > { %p754_p7 = scmp.lt.s32.totalorder %s745_s27, %s745_s27 }
  0x14   : > { %p736_p12 = pneg %p936_p11 }
  0x15   : > { %p755_p10 = por %p754_p7, %p753_p5 }
  0x16   : > { %p748_p0 = pnand %p746_p13, %p736_p12 }
  0x18   : > { %p749_p3 = pneg %p748_p0 }
  0x1a   : > { %p756_p2 = pnand %p755_p10, %p749_p3 }
  0x1c   : > { %759 = shalt.err (!%p756_p2)
}
  0x1d   : > { %s859_s28 = smov 128   ;;  %s860_s29 = smov 8  }
  0x1e   : > { %674 = dma.hbm_to_vmem [thread:$0]  (!%p936_p11), %s1094_s1, 512, %s132_s22, [#allocation6], %s859_s28, %s859_s28, %s860_s29  }
  0x1f   : > { %p25_p2 = scmp.eq.s32.totalorder %s24_s26, 0  ;;  %p34_p9 = scmp.ne.s32.totalorder %s852_s14, %s848_s13 }
  0x20   : > { %p35_p10 = scmp.eq.s32.totalorder %s856_s15, 0  ;;  %p684_p12 = scmp.lt.s32.totalorder %s856_s15, 2 }
  0x21   : > { %s961_s5 = scalar_select %p25_p2, %s852_s14, %s27_s25  }
  0x22   : > { %p36_p13 = por %p35_p10, %p34_p9  ;;  %p1105_p0 = scmp.eq.s32.totalorder %s908_s16, 1 }
  0x23   : > { %s148_s7 = sand.u32 1, %s852_s14   ;;  %s622_s8 = sshll.u32 %s856_s15, 8 }
  0x24   : > { %p965_p3 = por %p1105_p0, %p34_p9  ;;  %s601_s9 = sshll.u32 %s148_s7, 4 }
  0x25   : > { %s974_s17 = scalar_lea.hbm %s1093_s0, %s622_s8  ;;  %s152_s21 = scalar_lea.vmem [#allocation2], %s601_s9 }
  0x26   : > { %s1106_s6 = scalar_select %p965_p3, 1, 0 }
  0x27   : > { %s159_s22 = sshll.u32 %s152_s21, 4  ;;  %p976_p11 = pnand %p684_p12, %p36_p13  ;;  %s980_s22 = int_to_ptr.vmem [resolvable:$true] %s159_s22 }
  0x28   : > { %s982_s25 = scalar_lea.sflag [#allocation3], %s148_s7  ;;  %s760_s26 = scalar_lea.hbm %s974_s17, 256 }
  0x29   : > { %p761_p5 = scmp.ne.s32.totalorder %s974_s17, %s760_s26  ;;  %p762_p7 = pneg %p976_p11 }
  0x2a   : > { %s765_s4 = scalar_lea.hbm %s1093_s0, 512  ;;  %p766_p10 = scmp.lt.s32.totalorder %s974_s17, %s1093_s0 }
  0x2b   : > { %p763_p2 = pnand %p762_p7, %p761_p5  ;;  %p767_p12 = scmp.lt.s32.totalorder %s765_s4, %s760_s26 }
  0x2d   : > { %p764_p9 = pneg %p763_p2  ;;  %p768_p13 = por %p767_p12, %p766_p10 }
  0x2f   : > { %p769_p0 = pnand %p768_p13, %p764_p9 }
  0x31   : > { %772 = shalt.err (!%p769_p0)
}
  0x32   : > { %s773_s7 = scalar_lea.vmem %s980_s22, 256  ;;  %s861_s10 = smov [#allocation2]  }
  0x33   : > { %p774_p1 = scmp.ne.s32.totalorder %s980_s22, %s773_s7  ;;  %s778_s11 = sshll.u32 %s861_s10, 4  ;;  %s779_s11 = int_to_ptr.vmem [resolvable:$false] %s778_s11 }
  0x34   : > { %s780_s21 = scalar_lea.vmem %s779_s11, 512  ;;  %p781_p2 = scmp.lt.s32.totalorder %s980_s22, %s779_s11 }
  0x35   : > { %p776_p6 = pnand %p774_p1, %p762_p7  ;;  %p782_p3 = scmp.lt.s32.totalorder %s780_s21, %s773_s7 }
  0x37   : > { %p777_p5 = pneg %p776_p6  ;;  %p783_p4 = por %p782_p3, %p781_p2 }
  0x39   : > { %p784_p8 = pnand %p783_p4, %p777_p5 }
  0x3b   : > { %787 = shalt.err (!%p784_p8)
}
  0x3c   : > { %678 = dma.hbm_to_vmem [thread:$0]  (!%p976_p11), %s974_s17, 256, %s980_s22, %s982_s25, %s859_s28, %s859_s28, %s860_s29  }
  0x3d   : > { %p1108_p1 = scmp.ne.s32.totalorder %s1103_s20, 0 }
  0x3e   : > { %s1009_s26 = sand.u32 (!%p1108_p1), 1, %s848_s13   ;;  %p1109_p4 = scmp.ne.s32.totalorder (!%p1108_p1), %s1101_s18, 0 }
  0x3f   : > { %171 = sbr.rel (%p1108_p1) target bundleno = 1119 (0x45f), region = 32  ;;  %s605_s27 = sshll.u32 (!%p1108_p1), %s1009_s26, 4 }
  0x40   : > { %s174_s30 = scalar_lea.sflag (!%p1108_p1), [#allocation3], %s1009_s26  ;;  %s177_s23 = scalar_lea.vmem (!%p1108_p1), [#allocation2], %s605_s27 }
  0x44   : > { %831 = dma.done.wait (%p1109_p4), %s174_s30, 256  }
  0x45   : > { %833 = vsyncadd (%p1109_p4), %s174_s30, 4294967040  ;;  %p1110_p6 = scmp.eq.s32.totalorder %s908_s16, 0 }
  0x47   : > { %835 = dma.done.wait (%p1110_p6), [#allocation6], 512   ;;  %p1111_p8 = pmov %p1110_p6 }
  0x48   : > { %vm217_vm0 = vcmask 261120   ;;  %v209_v0 = vld [vmem:[#allocation5 + $0x18] sm:$0xff]  ;;  %v208_v1 = vld [vmem:[#allocation5 + $0x10] sm:$0xff]  ;;  %v207_v3 = vld [vmem:[#allocation5 + $0x8] sm:$0xff]  ;;  %s862_s28 = smov 96   ;;  %vm388_vm1 = vcmask 130048  }
  0x49   : > { %837 = vsyncadd (%p1111_p8), [#allocation6], 4294966784  ;;  %638 = vmatprep.subr.mxu0 %v209_v0  ;;  %v204_v2 = vld [vmem:[%s177_s23] sm:$0xff]  ;;  %v205_v5 = vld [vmem:[%s177_s23 + $0x8] sm:$0xff]  ;;  %s863_s29 = smov 64   ;;  %s203_s17 = scalar_lea.vmem [#allocation7], %s605_s27 }
  0x4a   : > { %639 = vmatpush3.msra.mxu0 %v209_v0  ;;  %646 = vmatprep.mubr.msk.f32.mxu0 %vm217_vm0, %v204_v2  ;;  %v206_v4 = vld [vmem:[#allocation5] sm:$0xff]  ;;  %s514_s22 = sshll.u32 %s203_s17, 4  ;;  %s623_s25 = sshll.u32 %s908_s16, 8  ;;  %s1043_s22 = int_to_ptr.vmem [resolvable:$true] %s514_s22 }
  0x4b   : > { %640 = vmatprep.subr.mxu0 %v208_v1  ;;  %v608_v6 = vld [vmem:[%s1095_s2] ss:$0 sm:$0xff]  ;;  %s1048_s9 = scalar_lea.hbm %s1096_s3, %s623_s25  ;;  %s501_s7 = scalar_lea.sflag [#allocation4], %s1009_s26 }
  0x4c   : > { %641 = vmatpush3.msra.mxu0 %v208_v1  ;;  %s788_s10 = scalar_lea.vmem %s1043_s22, 256  ;;  %p1112_p11 = scmp.ne.s32.totalorder %s1106_s6, 0 }
  0x4d   : > { %642 = vmatprep.subr.mxu0 %v207_v3  ;;  %p789_p3 = scmp.ne.s32.totalorder %s1043_s22, %s788_s10  ;;  %s864_s16 = smov [#allocation7]  }
  0x4e   : > { %643 = vmatpush3.msra.mxu0 %v207_v3  ;;  %s792_s11 = sshll.u32 %s864_s16, 4  ;;  %s793_s11 = int_to_ptr.vmem [resolvable:$false] %s792_s11 }
  0x4f   : > { %644 = vmatprep.subr.mxu0 %v206_v4  ;;  %p790_p7 = pnand %p789_p3, %p1112_p11  ;;  %s794_s21 = scalar_lea.vmem %s793_s11, 512 }
  0x50   : > { %645 = vmatpush3.msra.mxu0 %v206_v4  ;;  %p795_p10 = scmp.lt.s32.totalorder %s1043_s22, %s793_s11  ;;  %p796_p12 = scmp.lt.s32.totalorder %s794_s21, %s788_s10 }
  0x51   : > { %647 = vmatmul.mubr.msk.f32.vlgmr.msra.gmra.mxu0 %vm217_vm0, %v205_v5  ;;  %p791_p9 = pneg %p790_p7 }
  0x52   : > { %p797_p13 = por %p796_p12, %p795_p10 }
  0x54   : > { %p798_p0 = pnand %p797_p13, %p791_p9 }
 0x111   : > { %v648_v7 = vpop.f32.mrf.mxu0 }
 0x112   : > { %v296_v8 = vadd.f32 %v648_v7, %v608_v6 }
 0x113   : > { %v290_v9 = vpop.f32.mrf.mxu0 }
 0x114   : > { %v291_v10 = vadd.f32 %v608_v6, %v290_v9  ;;  %303 = vrot.lane.b32.xlu0 %v296_v8, %s862_s28 }
 0x116   : > { %653 = vmatprep.mubr.msk.f32.mxu1 %vm217_vm0, %v291_v10 }
 0x118   : > { %301 = vrot.lane.b32.xlu0 %v291_v10, %s862_s28 }
 0x186   : > { %v304_v11 = vpop.permute.xlu0 %303 }
 0x187   : > { %649 = vmatprep.subr.msk.mxu1 %vm217_vm0, %v304_v11 }
 0x188   : > { %650 = vmatpush3.xpose.msk.msra.mxu1 %vm217_vm0, %v304_v11 }
 0x18a   : > { %v302_v12 = vpop.permute.xlu0 %301 }
 0x18b   : > { %651 = vmatprep.subr.msk.mxu1 %vm217_vm0, %v302_v12 }
 0x18c   : > { %652 = vmatpush3.xpose.msk.msra.mxu1 %vm217_vm0, %v302_v12 }
 0x18f   : > { %654 = vmatmul.mubr.msk.f32.vlgmr.msra.gmra.mxu1 %vm217_vm0, %v296_v8 }
 0x24f   : > { %v655_v13 = vpop.f32.mrf.mxu1 }
 0x250   : > { %v392_v16 = vsel %vm388_vm1, %v655_v13, -inf }
 0x251   : > { %v379_v14 = vpop.f32.mrf.mxu1 }
 0x252   : > { %v389_v15 = vsel %vm388_vm1, %v379_v14, -inf }
 0x253   : > { %390 = vmax.xlane.f32.xlu1 %v389_v15 }
 0x257   : > { %393 = vmax.xlane.f32.xlu1 %v392_v16 }
 0x2dc   : > { %v391_v17 = vpop.xlane.xlu1 %390 }
 0x2dd   : > { %v395_v18 = vsub.f32 %v379_v14, %v391_v17 }
 0x2df   : > { %v397_v19 = vmul.f32 1.442695, %v395_v18 }
 0x2e0   : > { %v394_v20 = vpop.xlane.xlu1 %393 }
 0x2e1   : > { %726 = vpow2.f32 %v397_v19  ;;  %v396_v21 = vsub.f32 %v655_v13, %v394_v20 }
 0x2e3   : > { %v399_v22 = vmul.f32 1.442695, %v396_v21 }
 0x2e5   : > { %728 = vpow2.f32 %v399_v22 }
 0x2ee   : > { %v727_v23 = vpop.eup %726 }
 0x2ef   : > { %v401_v24 = vsel %vm388_vm1, %v727_v23, 0.0 }
 0x2f0   : > { %402 = vadd.xlane.f32.xlu0 %v401_v24 }
 0x2f2   : > { %v729_v25 = vpop.eup %728 }
 0x2f3   : > { %v404_v26 = vsel %vm388_vm1, %v729_v25, 0.0 }
 0x2f4   : > { %405 = vadd.xlane.f32.xlu1 %v404_v26 }
 0x305   : > { %413 = vrot.lane.b32.xlu1 %v296_v8, %s863_s29 }
 0x309   : > { %411 = vrot.lane.b32.xlu1 %v291_v10, %s863_s29 }
 0x379   : > { %v403_v27 = vpop.xlane.xlu0 %402 }
 0x37a   : > { %730 = vrcp.f32 %v403_v27 }
 0x37d   : > { %v406_v28 = vpop.xlane.xlu1 %405 }
 0x37e   : > { %732 = vrcp.f32 %v406_v28 }
 0x381   : > { %v414_v29 = vpop.permute.xlu1 %413 }
 0x382   : > { %656 = vmatprep.subr.mxu0 %v414_v29 }
 0x383   : > { %657 = vmatpush3.msra.mxu0 %v414_v29 }
 0x385   : > { %v412_v30 = vpop.permute.xlu1 %411 }
 0x386   : > { %658 = vmatprep.subr.mxu0 %v412_v30 }
 0x387   : > { %v731_v31 = vpop.eup %730  ;;  %659 = vmatpush3.msra.mxu0 %v412_v30 }
 0x388   : > { %v408_v32 = vmul.f32 %v731_v31, %v727_v23 }
 0x38a   : > { %660 = vmatprep.mubr.msk.f32.mxu0 %vm388_vm1, %v408_v32 }
 0x38b   : > { %v733_v33 = vpop.eup %732 }
 0x38c   : > { %v410_v34 = vmul.f32 %v733_v33, %v729_v25 }
 0x38e   : > { %661 = vmatmul.mubr.msk.f32.vlgmr.msra.gmra.mxu0 %vm388_vm1, %v410_v34 }
 0x44e   : > { %v662_v35 = vpop.f32.mrf.mxu0 }
 0x44f   : > { %499 = vst.msk [vmem:[%s203_s17 + $0x8] sm:$0xff] %vm217_vm0, %v662_v35 }
 0x450   : > { %v489_v36 = vpop.f32.mrf.mxu0 }
 0x451   : > { %498 = vst.msk [vmem:[%s203_s17] sm:$0xff] %vm217_vm0, %v489_v36 }
 0x452   : > { %801 = shalt.err (!%p798_p0)
}
 0x453   : > { %s802_s27 = scalar_lea.hbm %s1048_s9, 256  ;;  %s806_s18 = scalar_lea.hbm %s1096_s3, 512 }
 0x454   : > { %p803_p5 = scmp.ne.s32.totalorder %s1048_s9, %s802_s27  ;;  %p807_p4 = scmp.lt.s32.totalorder %s1048_s9, %s1096_s3 }
 0x455   : > { %p808_p6 = scmp.lt.s32.totalorder %s806_s18, %s802_s27 }
 0x456   : > { %p804_p2 = pnand %p803_p5, %p1112_p11 }
 0x457   : > { %p809_p8 = por %p808_p6, %p807_p4 }
 0x458   : > { %p805_p1 = pneg %p804_p2 }
 0x45a   : > { %p810_p3 = pnand %p809_p8, %p805_p1 }
 0x45c   : > { %813 = shalt.err (!%p810_p3)
}
 0x45d   : > { %s865_s29 = smov 128   ;;  %s866_s17 = smov 8  }
 0x45e   : > { %669 = dma.vmem_to_hbm [thread:$0]  (%p1112_p11), %s1043_s22, 256, %s1048_s9, %s501_s7, %s865_s29, %s865_s29, %s866_s17  }
 0x45f PF: > { %s529_s25 = sand.u32 1, %s844_s12   ;;  %p1113_p7 = scmp.ne.s32.totalorder %s1102_s19, 0 }
 0x460   : > { %p1114_p9 = scmp.ge.s32.totalorder %s856_s15, 2  ;;  %s530_s4 = scalar_lea.sflag [#allocation4], %s529_s25 }
 0x462   : > { %p680_p10 = pnand %p1114_p9, %p1113_p7 }
 0x464   : > { %p681_p12 = pneg %p680_p10 }
 0x466   : > { %839 = dma.done.wait (%p681_p12), %s530_s4, 256  }
 0x467   : > { %841 = vsyncadd (%p681_p12), %s530_s4, 4294967040  ;;  %p17_p13 = scmp.ge.s32.totalorder %s941_s24, 4   ;;  %s1115_s12 = smov %s848_s13 }
 0x468   : > { %s1116_s13 = smov %s852_s14  ;;  %s1117_s14 = smov %s961_s5 }
 0x469   : > { %s1118_s15 = smov %s941_s24  ;;  %19 = sbr.rel (!%p17_p13) target bundleno = 6 (0x6), region = 81 }
 0x46e   :  { %535 = vsyncpa [#allocation3], 1 }
 0x46f   :  { %537 = vsyncpa [#allocation3 + $0x1], 1 }
 0x470   :  { %538 = vsyncpa [#allocation6], 1 }
 0x471   :  { %539 = vsyncpa [#allocation4], 1 }
 0x472   :  { %541 = vsyncpa [#allocation4 + $0x1], 1 }

</bundles_post_ra>
